<compile_context>
chip_gen: v5e
topology: v5e:2x2
jax: 0.10.0
libtpu: 0.0.40
codegen_flags: <defaults>
</compile_context>

<pallas_src>
import jax
import jax.numpy as jnp
from jax.experimental import pallas as pl
from jax.experimental.pallas import tpu as pltpu


def _critic_kernel(s_ref, a_ref, ws_ref, wa_ref, b_ref, out_ref):
    # s_ref  : (tb, S)  activations, batch on sublanes, features on lanes
    # a_ref  : (tb, A)
    # ws_ref : (1, S)   resident weight row (same block every grid step)
    # wa_ref : (1, A)   resident weight row
    # b_ref  : (1,)     bias scalar in SMEM
    # out_ref: (tb, 1)  f32 output tile
    s = s_ref[...].astype(jnp.float32)
    a = a_ref[...].astype(jnp.float32)
    ws = ws_ref[...].astype(jnp.float32)
    wa = wa_ref[...].astype(jnp.float32)
    # VPU broadcast-mul + XLU lane reduce; MXU stays free.
    acc = jnp.sum(s * ws, axis=-1, keepdims=True)
    acc = acc + jnp.sum(a * wa, axis=-1, keepdims=True)
    out_ref[...] = acc + b_ref[0]


def _pick_batch_tile(B, state_dim, action_dim,
                     vmem_budget_bytes=16 * 1024 * 1024,
                     max_tile=65536, split_threshold=1024):
    """Largest safe batch tile (multiple of 8 unless it covers the full batch).

    VMEM cost per batch row is dominated by lane padding (features < 128 pad
    to a full 128-lane vreg row), double-buffered for the two inputs and the
    output.  The budget is kept well under v7x's 32 MiB default scoped VMEM.
    """
    def lane_pad(d):
        return 128 * (-(-d // 128))

    per_row_bytes = 2 * 4 * (lane_pad(state_dim) + lane_pad(action_dim) + lane_pad(1))
    cap = max(8, min(max_tile, (vmem_budget_bytes // per_row_bytes) // 8 * 8))

    if B <= cap:
        if B >= split_threshold:
            # >= 2 grid steps so both v7x TensorCores get a share of the batch.
            tb = -(-(-(-B // 2)) // 8) * 8      # round_up(ceil(B/2), 8)
            return min(tb, cap)
        return B            # one block covering the whole batch (always legal)
    return cap


def prepare_critic_params(weight, bias, state_dim, action_dim):
    """One-time parameter layout prep (hoisted out of the per-step path).

    weight: (1, state_dim + action_dim) float32  (PyTorch nn.Linear layout)
    bias  : (1,) float32
    returns w_s (1, state_dim), w_a (1, action_dim), b (1,)
    """
    w = jnp.asarray(weight, jnp.float32).reshape(1, -1)
    w_s = w[:, :state_dim]
    w_a = w[:, state_dim:state_dim + action_dim]
    b = jnp.asarray(bias, jnp.float32).reshape(1)
    return w_s, w_a, b


@jax.jit
def critic_forward(state, action, w_s, w_a, b):
    """Pallas equivalent of Critic.forward.

    state : (B, state_dim)  float32 or bfloat16
    action: (B, action_dim) float32 or bfloat16
    w_s   : (1, state_dim)  float32   (from prepare_critic_params)
    w_a   : (1, action_dim) float32
    b     : (1,) float32
    returns (B, 1) float32
    """
    B, S = state.shape
    B2, A = action.shape
    assert B == B2
    assert w_s.shape == (1, S) and w_a.shape == (1, A)

    tb = _pick_batch_tile(B, S, A)
    grid = (pl.cdiv(B, tb),)

    out = pl.pallas_call(
        _critic_kernel,
        out_shape=jax.ShapeDtypeStruct((B, 1), jnp.float32),
        grid=grid,
        in_specs=[
            pl.BlockSpec((tb, S), lambda i: (i, 0)),            # state tile
            pl.BlockSpec((tb, A), lambda i: (i, 0)),            # action tile
            pl.BlockSpec((1, S), lambda i: (0, 0)),             # resident weight
            pl.BlockSpec((1, A), lambda i: (0, 0)),             # resident weight
            pl.BlockSpec(memory_space=pltpu.MemorySpace.SMEM),  # bias scalar
        ],
        out_specs=pl.BlockSpec((tb, 1), lambda i: (i, 0)),
        compiler_params=pltpu.CompilerParams(
            dimension_semantics=("parallel",)),
    )(state, action, w_s, w_a, b)

    return out


if __name__ == "__main__":
    # Small shapes consistent with the module: Critic(state_dim=4, action_dim=2)
    B, STATE_DIM, ACTION_DIM = 8, 4, 2

    key = jax.random.PRNGKey(0)
    k_state, k_action, k_w, k_b = jax.random.split(key, 4)

    state = jax.random.normal(k_state, (B, STATE_DIM), dtype=jnp.float32)
    action = jax.random.normal(k_action, (B, ACTION_DIM), dtype=jnp.float32)

    # Deterministic nn.Linear(state_dim + action_dim, 1) init:
    # uniform(-1/sqrt(fan_in), 1/sqrt(fan_in)) like PyTorch's default.
    fan_in = STATE_DIM + ACTION_DIM
    bound = 1.0 / (fan_in ** 0.5)
    weight = jax.random.uniform(k_w, (1, fan_in), jnp.float32, -bound, bound)
    bias = jax.random.uniform(k_b, (1,), jnp.float32, -bound, bound)

    # Parameter layout prep runs once (not per forward call).
    w_s, w_a, b = prepare_critic_params(weight, bias, STATE_DIM, ACTION_DIM)

    out = critic_forward(state, action, w_s, w_a, b)
    out = jax.block_until_ready(out)

    # Pure-JAX reference check (same semantics as the PyTorch forward).
    ref = jnp.concatenate([state, action], axis=1) @ weight.T + bias
    assert out.shape == (B, 1)
    assert jnp.allclose(out, ref, atol=1e-5, rtol=1e-5)

    # TODO(synk): optimizer / checkpoint I/O from the PyTorch module are
    # training utilities with no kernel equivalent and are intentionally omitted.
    print("KERNEL_OK")
</pallas_src>

<mosaic_0001>
module attributes {stable_mosaic.version = 11 : i64} {
  func.func @_critic_kernel(%arg0: i32, %arg1: memref<8x4xf32, #tpu.memory_space<vmem>>, %arg2: memref<8x2xf32, #tpu.memory_space<vmem>>, %arg3: memref<1x4xf32, #tpu.memory_space<vmem>>, %arg4: memref<1x2xf32, #tpu.memory_space<vmem>>, %arg5: memref<1xf32, #tpu.memory_space<smem>>, %arg6: memref<8x1xf32, #tpu.memory_space<vmem>>) attributes {dimension_semantics = [#tpu.dimension_semantics<parallel>], iteration_bounds = array<i64: 1>, scalar_prefetch = 0 : i64, scratch_operands = 0 : i64, tpu.core_type = #tpu.core_type<tc>, window_params = [{transform_indices = @transform_0, window_bounds = array<i64: 8, 4>}, {transform_indices = @transform_1, window_bounds = array<i64: 8, 2>}, {pipeline_mode = #tpu.pipeline_mode<synchronous>, transform_indices = @transform_2, window_bounds = array<i64: 1, 4>}, {pipeline_mode = #tpu.pipeline_mode<synchronous>, transform_indices = @transform_3, window_bounds = array<i64: 1, 2>}, {transform_indices = @transform_4, window_bounds = array<i64: 1>}, {transform_indices = @transform_5, window_bounds = array<i64: 8, 1>}]} {
    %c0 = arith.constant 0 : index
    %c0_0 = arith.constant 0 : index
    %0 = vector.load %arg1[%c0, %c0_0] : memref<8x4xf32, #tpu.memory_space<vmem>>, vector<8x4xf32>
    %c0_1 = arith.constant 0 : index
    %c0_2 = arith.constant 0 : index
    %1 = vector.load %arg2[%c0_1, %c0_2] : memref<8x2xf32, #tpu.memory_space<vmem>>, vector<8x2xf32>
    %c0_3 = arith.constant 0 : index
    %c0_4 = arith.constant 0 : index
    %2 = vector.load %arg3[%c0_3, %c0_4] : memref<1x4xf32, #tpu.memory_space<vmem>>, vector<1x4xf32>
    %c0_5 = arith.constant 0 : index
    %c0_6 = arith.constant 0 : index
    %3 = vector.load %arg4[%c0_5, %c0_6] : memref<1x2xf32, #tpu.memory_space<vmem>>, vector<1x2xf32>
    %4 = vector.broadcast %2 : vector<1x4xf32> to vector<8x4xf32>
    %5 = arith.mulf %0, %4 : vector<8x4xf32>
    %cst = arith.constant dense<0.000000e+00> : vector<8xf32>
    %6 = vector.multi_reduction <add>, %5, %cst [1] : vector<8x4xf32> to vector<8xf32>
    %7 = vector.shape_cast %6 : vector<8xf32> to vector<8x1xf32>
    %8 = vector.broadcast %3 : vector<1x2xf32> to vector<8x2xf32>
    %9 = arith.mulf %1, %8 : vector<8x2xf32>
    %cst_7 = arith.constant dense<0.000000e+00> : vector<8xf32>
    %10 = vector.multi_reduction <add>, %9, %cst_7 [1] : vector<8x2xf32> to vector<8xf32>
    %11 = vector.shape_cast %10 : vector<8xf32> to vector<8x1xf32>
    %12 = arith.addf %7, %11 : vector<8x1xf32>
    %c0_8 = arith.constant 0 : index
    %13 = memref.load %arg5[%c0_8] : memref<1xf32, #tpu.memory_space<smem>>
    %14 = vector.broadcast %13 : f32 to vector<8x1xf32>
    %15 = arith.addf %12, %14 : vector<8x1xf32>
    %c0_9 = arith.constant 0 : index
    %c0_10 = arith.constant 0 : index
    %16 = vector.load %arg6[%c0_9, %c0_10] : memref<8x1xf32, #tpu.memory_space<vmem>>, vector<8x1xf32>
    tpu.vector_store %arg6[%c0_9, %c0_10], %15 {strides = array<i32>} : memref<8x1xf32, #tpu.memory_space<vmem>>, vector<8x1xf32>,
    return
  }
  func.func @transform_0(%arg0: i32) -> (i32, i32) {
    %c0_i32 = arith.constant 0 : i32
    %c0_i32_0 = arith.constant 0 : i32
    return %arg0, %c0_i32 : i32, i32
  }
  func.func @transform_1(%arg0: i32) -> (i32, i32) {
    %c0_i32 = arith.constant 0 : i32
    %c0_i32_0 = arith.constant 0 : i32
    return %arg0, %c0_i32 : i32, i32
  }
  func.func @transform_2(%arg0: i32) -> (i32, i32) {
    %c0_i32 = arith.constant 0 : i32
    %c0_i32_0 = arith.constant 0 : i32
    %c0_i32_1 = arith.constant 0 : i32
    return %c0_i32, %c0_i32_0 : i32, i32
  }
  func.func @transform_3(%arg0: i32) -> (i32, i32) {
    %c0_i32 = arith.constant 0 : i32
    %c0_i32_0 = arith.constant 0 : i32
    %c0_i32_1 = arith.constant 0 : i32
    return %c0_i32, %c0_i32_0 : i32, i32
  }
  func.func @transform_4(%arg0: i32) -> i32 {
    %c0_i32 = arith.constant 0 : i32
    %c0_i32_0 = arith.constant 0 : i32
    return %c0_i32 : i32
  }
  func.func @transform_5(%arg0: i32) -> (i32, i32) {
    %c0_i32 = arith.constant 0 : i32
    %c0_i32_0 = arith.constant 0 : i32
    return %arg0, %c0_i32 : i32, i32
  }
}

</mosaic_0001>

<bundles_post_ra>
// kernel: critic_forward.1
= control target key start
LH: loop header
LB: loop body
LE: loop exit
PB: predicated region body
PF: predicated region fallthrough
CT: control target
= control target key end

     0   :  { %vm29_vm0 = vcmask 31744   ;;  %vm37_vm1 = vcmask 15360   ;;  %vm45_vm2 = vcmask 7168   ;;  %s101_s0 = inlined_call_operand.vmem [shape: f32[8,4], index: 0, kind: input, shape index: {}]   ;;  %s102_s2 = inlined_call_operand.vmem [shape: f32[1,4], index: 2, kind: input, shape index: {}]   ;;  %s103_s3 = inlined_call_operand.vmem [shape: f32[1,2], index: 3, kind: input, shape index: {}]   ;;  %s104_s1 = inlined_call_operand.vmem [shape: f32[8,2], index: 1, kind: input, shape index: {}]   ;;  %s105_s4 = inlined_call_operand.<no memory space> [shape: f32[1], index: 4, kind: input, shape index: {}]   ;;  %s106_s5 = inlined_call_operand.vmem [shape: f32[8,1], index: 5, kind: output, shape index: {}]  }
   0x1   :  { %v21_v0 = vld [vmem:[%s101_s0] sm:$0xff]  ;;  %v43_v9 = vstv %s105_s4 }
   0x2   :  { %v51_v1 = vld [vmem:[%s102_s2] ss:$0 sm:$0xff] }
   0x3   :  { %v28_v2 = vmul.f32 %v51_v1, %v21_v0  ;;  %v52_v3 = vld [vmem:[%s103_s3] ss:$0 sm:$0xff] }
   0x4   :  { %v22_v4 = vld [vmem:[%s104_s1] sm:$0xff] }
   0x5   :  { %v30_v5 = vsel %vm29_vm0, %v28_v2, 0.0  ;;  %v36_v6 = vmul.f32 %v52_v3, %v22_v4 }
   0x6   :  { %31 = vadd.xlane.f32.xlu0 %v30_v5 }
   0x7   :  { %v38_v7 = vsel %vm37_vm1, %v36_v6, 0.0 }
   0xe   :  { %39 = vadd.xlane.f32.xlu0 %v38_v7 }
  0x79   :  { %v32_v8 = vpop.xlane.xlu0 %31 }
  0x81   :  { %v40_v10 = vpop.xlane.xlu0 %39 }
  0x82   :  { %v41_v11 = vadd.f32 %v40_v10, %v32_v8 }
  0x84   :  { %v44_v12 = vadd.f32 %v43_v9, %v41_v11 }
  0x86   :  { %46 = vst.msk [vmem:[%s106_s5] sm:$0xff] %vm45_vm2, %v44_v12 }

</bundles_post_ra>
